<compile_context>
chip_gen: v6e
topology: v6e:2x2x1
jax: 0.10.0
libtpu: 0.0.40
codegen_flags: <defaults>
</compile_context>

<pallas_src>
import functools

import jax
import jax.numpy as jnp
from jax import lax
from jax.experimental import pallas as pl
from jax.experimental.pallas import tpu as pltpu


def _round_up(x, m):
    return (x + m - 1) // m * m


# ----------------------------- Pallas kernels ------------------------------

def _ln_qkv_kernel(x_ref, g_ref, b_ref, w_ref, q_ref, k_ref, v_ref, *, hd):
    """Fused LayerNorm (eps=1e-5, biased variance) + qkv Linear(bias=False).

    Emits q / k / v as three lane-dense (rows, n_head*d_head) bf16 outputs in
    the layout the attention kernel consumes directly (no HBM transposes)."""
    x = x_ref[...].astype(jnp.float32)                       # (tm, d_model)
    mu = jnp.mean(x, axis=-1, keepdims=True)
    var = jnp.mean(jnp.square(x - mu), axis=-1, keepdims=True)
    xn = (x - mu) * lax.rsqrt(var + 1e-5)
    xn = xn * g_ref[...] + b_ref[...]                        # (1, d_model) broadcast
    heads = jnp.dot(xn.astype(jnp.bfloat16), w_ref[...],     # bf16 MXU, f32 acc
                    preferred_element_type=jnp.float32)      # (tm, 3*hd)
    q_ref[...] = heads[:, :hd].astype(jnp.bfloat16)
    k_ref[...] = heads[:, hd:2 * hd].astype(jnp.bfloat16)
    v_ref[...] = heads[:, 2 * hd:].astype(jnp.bfloat16)


def _r_net_kernel(r_ref, w_ref, o_ref):
    """r_net projection (tiny: rlen x d_model), bf16 MXU, bf16 output."""
    o_ref[...] = jnp.dot(r_ref[...].astype(jnp.bfloat16), w_ref[...],
                         preferred_element_type=jnp.float32).astype(jnp.bfloat16)


def _rel_shift(bd, qlen, rlen):
    """Exact torch _rel_shift (zero-pad / view trick, incl. the wrap-into-
    next-row behaviour), fully vectorized.

    result[i, j] = bd[i, j + R-1-i]   for j <= i
                 = 0                  for j == i+1
                 = bd[i+1, j-i-2]     for j >= i+2        (qlen == rlen)

    The per-row variable right-roll by (i+1) is done as a binary decomposition
    of static jnp.roll's + selects (no per-row stores / unaligned slices).
    TODO(synk): a single strided pltpu.roll(bd, 1, axis=-1, stride=1,
    stride_axis=0) would do this in one XLU op once its semantics are pinned.
    """
    row = lax.broadcasted_iota(jnp.int32, (qlen, rlen), 0)
    col = lax.broadcasted_iota(jnp.int32, (qlen, rlen), 1)
    amt = (lax.broadcasted_iota(jnp.int32, (qlen, 1), 0) + 1) % rlen   # (Q, 1)

    y = bd
    for b in range(max((rlen - 1).bit_length(), 1)):
        take = ((amt >> b) & 1) == 1                         # (Q, 1) bool
        y = jnp.where(take, jnp.roll(y, 1 << b, axis=-1), y)
    # y[i, j] == bd[i, (j - i - 1) mod rlen]
    y_up = jnp.concatenate([y[1:], jnp.zeros_like(y[:1])], axis=0)
    return jnp.where(col <= row, y,
                     jnp.where(col == row + 1, jnp.zeros_like(y), y_up))


def _fused_attn_kernel(q_ref, k_ref, v_ref, rk_ref, rwb_ref, rrb_ref, m_ref,
                       wo_ref, o_ref, *, scale, h_tile, d_head, qlen, rlen):
    """Per (batch, head-tile) grid step: AC/BD scores, exact rel_shift,
    query-axis mask, softmax, P@V and the fused o_net partial product -- all
    in VMEM.  The o_net result accumulates into the resident output block
    across the (arbitrary) head-tile grid axis."""
    h_step = pl.program_id(1)

    q = q_ref[0].astype(jnp.float32)                         # (Q, ht*D)
    qw = ((q + rwb_ref[...]) * scale).astype(jnp.bfloat16)   # fold 1/sqrt(D)
    qr = ((q + rrb_ref[...]) * scale).astype(jnp.bfloat16)
    k = k_ref[0]                                             # (K, ht*D) bf16
    v = v_ref[0]                                             # (K, ht*D) bf16
    rk = rk_ref[...]                                         # (R, ht*D) bf16
    mq = m_ref[0]                                            # (Q, 1) query mask

    dn_t = (((1,), (1,)), ((), ()))                          # contract last dims

    pv = []
    for h in range(h_tile):                                  # heads in this tile
        sl = slice(h * d_head, (h + 1) * d_head)
        ac = lax.dot_general(qw[:, sl], k[:, sl], dn_t,
                             preferred_element_type=jnp.float32)   # (Q, K)
        bd = lax.dot_general(qr[:, sl], rk[:, sl], dn_t,
                             preferred_element_type=jnp.float32)   # (Q, R)
        s = ac + _rel_shift(bd, qlen, rlen)                  # klen == rlen
        s = jnp.where(mq > 0.0, s, -1e30)                    # mask_logits
        s = s - jnp.max(s, axis=-1, keepdims=True)
        e = jnp.exp(s)
        p = e * pl.reciprocal(jnp.sum(e, axis=-1, keepdims=True), approx=True)
        pv.append(jnp.dot(p.astype(jnp.bfloat16), v[:, sl],
                          preferred_element_type=jnp.float32))     # (Q, D)

    # single o_net matmul: contraction h_tile*d_head, lane-dense (Q, d_model)
    attn_vec = jnp.concatenate(pv, axis=-1).astype(jnp.bfloat16)   # (Q, ht*D)
    partial = jnp.dot(attn_vec, wo_ref[...],
                      preferred_element_type=jnp.float32)          # (Q, d_model)

    @pl.when(h_step == 0)
    def _():
        o_ref[0] = partial

    @pl.when(h_step != 0)
    def _():
        o_ref[0] = o_ref[0] + partial


# ------------------------------ JAX wrapper ---------------------------------

def _pick_head_tile(n_head, d_head, qlen, rlen, d_model,
                    budget_bytes=16 * 1024 * 1024):
    """Largest divisor of n_head whose per-grid-step working set stays inside
    a conservative VMEM budget, with h_tile*d_head a multiple of 128 lanes
    (or the full head dim)."""
    smallest_ok = n_head
    for h in range(n_head, 0, -1):
        if n_head % h:
            continue
        if h != n_head and (h * d_head) % 128 != 0:
            continue
        hd = h * d_head
        est = (3 * 2 * qlen * hd * 2          # q/k/v blocks, bf16, double-buffered
               + 2 * rlen * hd * 2            # r_head_k block
               + 2 * hd * d_model * 2         # w_o block
               + 2 * qlen * d_model * 4       # output block (f32)
               + 6 * qlen * rlen * 4)         # score-sized f32 temporaries
        smallest_ok = h
        if est <= budget_bytes:
            return h
    return smallest_ok


def rel_partial_mha_forward(params, w, mask, r, r_w_bias, r_r_bias):
    n_head, d_head = r_w_bias.shape
    bsz, d_model, qlen = w.shape
    rlen = r.shape[0]
    klen = qlen                                              # mems is None
    assert rlen == klen, "mems / attn_mask paths not supported (rlen must equal qlen)"
    hd = n_head * d_head
    scale = 1.0 / (d_head ** 0.5)

    # --- fused LayerNorm + qkv projection (pre_lnorm=True), row-tiled ---
    x = jnp.transpose(w, (0, 2, 1)).reshape(bsz * qlen, d_model)   # rows = (b, q)
    n_rows = bsz * qlen
    tm = min(512, _round_up(n_rows, 8))
    rows_p = _round_up(n_rows, tm)
    if rows_p != n_rows:
        x = jnp.pad(x, ((0, rows_p - n_rows), (0, 0)))

    ln_g = params["ln_g"].reshape(1, d_model).astype(jnp.float32)
    ln_b = params["ln_b"].reshape(1, d_model).astype(jnp.float32)
    w_qkv = params["w_qkv"].astype(jnp.bfloat16)

    q_all, k_all, v_all = pl.pallas_call(
        functools.partial(_ln_qkv_kernel, hd=hd),
        grid=(rows_p // tm,),
        in_specs=[
            pl.BlockSpec((tm, d_model), lambda i: (i, 0)),
            pl.BlockSpec((1, d_model), lambda i: (0, 0)),
            pl.BlockSpec((1, d_model), lambda i: (0, 0)),
            pl.BlockSpec((d_model, 3 * hd), lambda i: (0, 0)),
        ],
        out_specs=[
            pl.BlockSpec((tm, hd), lambda i: (i, 0)),
            pl.BlockSpec((tm, hd), lambda i: (i, 0)),
            pl.BlockSpec((tm, hd), lambda i: (i, 0)),
        ],
        out_shape=[jax.ShapeDtypeStruct((rows_p, hd), jnp.bfloat16)] * 3,
        compiler_params=pltpu.CompilerParams(
            dimension_semantics=("parallel",),
            vmem_limit_bytes=48 * 1024 * 1024),
    )(x, ln_g, ln_b, w_qkv)

    # free reshapes only (rows are already in (b, q) order) -- no HBM transposes
    q_all = q_all[:n_rows].reshape(bsz, qlen, hd)
    k_all = k_all[:n_rows].reshape(bsz, qlen, hd)
    v_all = v_all[:n_rows].reshape(bsz, qlen, hd)

    # --- r_net projection (tiny: rlen x d_model) ---
    r_head_k = pl.pallas_call(
        _r_net_kernel,
        out_shape=jax.ShapeDtypeStruct((rlen, hd), jnp.bfloat16),
    )(r, params["w_r"].astype(jnp.bfloat16))

    # --- fused attention: grid = (batch, head-tile), o_net accumulated over heads ---
    h_tile = _pick_head_tile(n_head, d_head, qlen, rlen, d_model)
    n_ht = n_head // h_tile
    htd = h_tile * d_head

    rwb = r_w_bias.reshape(1, hd).astype(jnp.float32)
    rrb = r_r_bias.reshape(1, hd).astype(jnp.float32)
    wo = params["w_o"].astype(jnp.bfloat16)                  # (hd, d_model)
    mask_q = mask.astype(jnp.float32)[:, :, None]            # (bsz, qlen, 1)

    kernel = functools.partial(_fused_attn_kernel, scale=scale, h_tile=h_tile,
                               d_head=d_head, qlen=qlen, rlen=rlen)
    out_bqm = pl.pallas_call(
        kernel,
        grid=(bsz, n_ht),
        in_specs=[
            pl.BlockSpec((1, qlen, htd), lambda b, h: (b, 0, h)),
            pl.BlockSpec((1, klen, htd), lambda b, h: (b, 0, h)),
            pl.BlockSpec((1, klen, htd), lambda b, h: (b, 0, h)),
            pl.BlockSpec((rlen, htd), lambda b, h: (0, h)),
            pl.BlockSpec((1, htd), lambda b, h: (0, h)),
            pl.BlockSpec((1, htd), lambda b, h: (0, h)),
            pl.BlockSpec((1, qlen, 1), lambda b, h: (b, 0, 0)),
            pl.BlockSpec((htd, d_model), lambda b, h: (h, 0)),
        ],
        out_specs=pl.BlockSpec((1, qlen, d_model), lambda b, h: (b, 0, 0)),
        out_shape=jax.ShapeDtypeStruct((bsz, qlen, d_model), jnp.float32),
        compiler_params=pltpu.CompilerParams(
            dimension_semantics=("parallel", "arbitrary"),
            vmem_limit_bytes=48 * 1024 * 1024),
    )(q_all, k_all, v_all, r_head_k, rwb, rrb, mask_q, wo)

    # pre_lnorm=True: output = dropout(attn_out) == attn_out at inference
    return jnp.transpose(out_bqm, (1, 0, 2))                 # (qlen, bsz, d_model)


# ------------------------- pure-JAX reference ------------------------------

def reference_forward(params, w, mask, r, r_w_bias, r_r_bias):
    n_head, d_head = r_w_bias.shape
    bsz, d_model, qlen = w.shape
    rlen = r.shape[0]
    wt = jnp.transpose(w, (2, 0, 1))
    mu = wt.mean(-1, keepdims=True)
    var = ((wt - mu) ** 2).mean(-1, keepdims=True)
    xn = (wt - mu) / jnp.sqrt(var + 1e-5) * params["ln_g"] + params["ln_b"]
    w_heads = xn @ params["w_qkv"]
    r_head_k = (r @ params["w_r"]).reshape(rlen, n_head, d_head)
    w_heads = w_heads.reshape(qlen, bsz, 3, n_head, d_head)
    hq, hk, hv = w_heads[:, :, 0], w_heads[:, :, 1], w_heads[:, :, 2]
    AC = jnp.einsum("ibnd,jbnd->ijbn", hq + r_w_bias, hk)
    BD = jnp.einsum("ibnd,jnd->ijbn", hq + r_r_bias, r_head_k)
    zp = jnp.zeros((qlen, 1, bsz, n_head), BD.dtype)
    BD = jnp.concatenate([zp, BD], axis=1).reshape(rlen + 1, qlen, bsz, n_head)
    BD = BD[1:].reshape(qlen, rlen, bsz, n_head)
    score = (AC + BD) * (1.0 / d_head ** 0.5)
    m = mask.astype(jnp.float32).T[:, None, :, None]          # (qlen,1,bsz,1)
    score = score * m + (1.0 - m) * (-1e30)
    prob = jax.nn.softmax(score, axis=1)
    av = jnp.einsum("ijbn,jbnd->ibnd", prob, hv).reshape(qlen, bsz, n_head * d_head)
    return (av @ params["w_o"]).reshape(qlen, bsz, d_model)


# --------------------------------- main -------------------------------------

if __name__ == "__main__":
    bsz, qlen, d_model, n_head, d_head = 2, 8, 32, 2, 16
    rlen = qlen

    key = jax.random.PRNGKey(0)
    ks = jax.random.split(key, 8)
    params = dict(
        w_qkv=0.02 * jax.random.normal(ks[0], (d_model, 3 * n_head * d_head), jnp.float32),
        w_r=0.02 * jax.random.normal(ks[1], (d_model, n_head * d_head), jnp.float32),
        w_o=0.02 * jax.random.normal(ks[2], (n_head * d_head, d_model), jnp.float32),
        ln_g=jnp.ones((d_model,), jnp.float32),
        ln_b=jnp.zeros((d_model,), jnp.float32),
    )
    r_w_bias = 0.02 * jax.random.normal(ks[3], (n_head, d_head), jnp.float32)
    r_r_bias = 0.02 * jax.random.normal(ks[4], (n_head, d_head), jnp.float32)

    w = jax.random.normal(ks[5], (bsz, d_model, qlen), jnp.float32)      # NCL input
    r = jax.random.normal(ks[6], (rlen, d_model), jnp.float32)
    mask = (jax.random.uniform(ks[7], (bsz, qlen)) > 0.25).astype(jnp.float32)

    out = rel_partial_mha_forward(params, w, mask, r, r_w_bias, r_r_bias)
    out = jax.block_until_ready(out)

    ref = reference_forward(params, w, mask, r, r_w_bias, r_r_bias)
    assert out.shape == (qlen, bsz, d_model), out.shape
    err = float(jnp.max(jnp.abs(out - ref)))
    # bf16 MXU operands (f32 accumulation) vs. the all-f32 reference
    assert jnp.allclose(out, ref, rtol=2e-2, atol=2e-3), err
    print("KERNEL_OK")
</pallas_src>

<mosaic_0001>
module attributes {stable_mosaic.version = 11 : i64} {
  func.func @_ln_qkv_kernel(%arg0: i32, %arg1: memref<16x32xf32, #tpu.memory_space<vmem>>, %arg2: memref<1x32xf32, #tpu.memory_space<vmem>>, %arg3: memref<1x32xf32, #tpu.memory_space<vmem>>, %arg4: memref<32x96xbf16, #tpu.memory_space<vmem>>, %arg5: memref<16x32xbf16, #tpu.memory_space<vmem>>, %arg6: memref<16x32xbf16, #tpu.memory_space<vmem>>, %arg7: memref<16x32xbf16, #tpu.memory_space<vmem>>) attributes {dimension_semantics = [#tpu.dimension_semantics<parallel>], iteration_bounds = array<i64: 1>, scalar_prefetch = 0 : i64, scratch_operands = 0 : i64, tpu.core_type = #tpu.core_type<tc>, window_params = [{transform_indices = @transform_0, window_bounds = array<i64: 16, 32>}, {pipeline_mode = #tpu.pipeline_mode<synchronous>, transform_indices = @transform_1, window_bounds = array<i64: 1, 32>}, {pipeline_mode = #tpu.pipeline_mode<synchronous>, transform_indices = @transform_2, window_bounds = array<i64: 1, 32>}, {pipeline_mode = #tpu.pipeline_mode<synchronous>, transform_indices = @transform_3, window_bounds = array<i64: 32, 96>}, {transform_indices = @transform_4, window_bounds = array<i64: 16, 32>}, {transform_indices = @transform_5, window_bounds = array<i64: 16, 32>}, {transform_indices = @transform_6, window_bounds = array<i64: 16, 32>}]} {
    %c0 = arith.constant 0 : index
    %c0_0 = arith.constant 0 : index
    %0 = vector.load %arg1[%c0, %c0_0] : memref<16x32xf32, #tpu.memory_space<vmem>>, vector<16x32xf32>
    %cst = arith.constant dense<0.000000e+00> : vector<16xf32>
    %1 = vector.multi_reduction <add>, %0, %cst [1] : vector<16x32xf32> to vector<16xf32>
    %2 = vector.shape_cast %1 : vector<16xf32> to vector<16x1xf32>
    %cst_1 = arith.constant 3.200000e+01 : f32
    %3 = vector.broadcast %cst_1 : f32 to vector<16x1xf32>
    %4 = arith.divf %2, %3 : vector<16x1xf32>
    %5 = vector.broadcast %4 : vector<16x1xf32> to vector<16x32xf32>
    %6 = arith.subf %0, %5 : vector<16x32xf32>
    %7 = arith.mulf %6, %6 : vector<16x32xf32>
    %cst_2 = arith.constant dense<0.000000e+00> : vector<16xf32>
    %8 = vector.multi_reduction <add>, %7, %cst_2 [1] : vector<16x32xf32> to vector<16xf32>
    %9 = vector.shape_cast %8 : vector<16xf32> to vector<16x1xf32>
    %cst_3 = arith.constant 3.200000e+01 : f32
    %10 = vector.broadcast %cst_3 : f32 to vector<16x1xf32>
    %11 = arith.divf %9, %10 : vector<16x1xf32>
    %12 = vector.broadcast %4 : vector<16x1xf32> to vector<16x32xf32>
    %13 = arith.subf %0, %12 : vector<16x32xf32>
    %cst_4 = arith.constant 9.99999974E-6 : f32
    %14 = vector.broadcast %cst_4 : f32 to vector<16x1xf32>
    %15 = arith.addf %11, %14 : vector<16x1xf32>
    %16 = math.rsqrt %15 : vector<16x1xf32>
    %17 = vector.broadcast %16 : vector<16x1xf32> to vector<16x32xf32>
    %18 = arith.mulf %13, %17 : vector<16x32xf32>
    %c0_5 = arith.constant 0 : index
    %c0_6 = arith.constant 0 : index
    %19 = vector.load %arg2[%c0_5, %c0_6] : memref<1x32xf32, #tpu.memory_space<vmem>>, vector<1x32xf32>
    %20 = vector.broadcast %19 : vector<1x32xf32> to vector<16x32xf32>
    %21 = arith.mulf %18, %20 : vector<16x32xf32>
    %c0_7 = arith.constant 0 : index
    %c0_8 = arith.constant 0 : index
    %22 = vector.load %arg3[%c0_7, %c0_8] : memref<1x32xf32, #tpu.memory_space<vmem>>, vector<1x32xf32>
    %23 = vector.broadcast %22 : vector<1x32xf32> to vector<16x32xf32>
    %24 = arith.addf %21, %23 : vector<16x32xf32>
    %25 = arith.truncf %24 : vector<16x32xf32> to vector<16x32xbf16>
    %c0_9 = arith.constant 0 : index
    %c0_10 = arith.constant 0 : index
    %26 = vector.load %arg4[%c0_9, %c0_10] : memref<32x96xbf16, #tpu.memory_space<vmem>>, vector<32x96xbf16>
    %cst_11 = arith.constant dense<0.000000e+00> : vector<16x96xf32>
    %27 = tpu.matmul %25, %26, %cst_11 {dimension_numbers = #tpu.dot_dimension_numbers<[1], [0], [0], [1], [0, 0, 1, 1], [], []>} : vector<16x32xbf16>, vector<32x96xbf16>, vector<16x96xf32> -> vector<16x96xf32>
    %28 = vector.extract_strided_slice %27 {offsets = [0, 0], sizes = [16, 32], strides = [1, 1]} : vector<16x96xf32> to vector<16x32xf32>
    %29 = arith.truncf %28 : vector<16x32xf32> to vector<16x32xbf16>
    %c0_12 = arith.constant 0 : index
    %c0_13 = arith.constant 0 : index
    %30 = vector.load %arg5[%c0_12, %c0_13] : memref<16x32xbf16, #tpu.memory_space<vmem>>, vector<16x32xbf16>
    tpu.vector_store %arg5[%c0_12, %c0_13], %29 {strides = array<i32>} : memref<16x32xbf16, #tpu.memory_space<vmem>>, vector<16x32xbf16>,
    %31 = vector.extract_strided_slice %27 {offsets = [0, 32], sizes = [16, 32], strides = [1, 1]} : vector<16x96xf32> to vector<16x32xf32>
    %32 = arith.truncf %31 : vector<16x32xf32> to vector<16x32xbf16>
    %c0_14 = arith.constant 0 : index
    %c0_15 = arith.constant 0 : index
    %33 = vector.load %arg6[%c0_14, %c0_15] : memref<16x32xbf16, #tpu.memory_space<vmem>>, vector<16x32xbf16>
    tpu.vector_store %arg6[%c0_14, %c0_15], %32 {strides = array<i32>} : memref<16x32xbf16, #tpu.memory_space<vmem>>, vector<16x32xbf16>,
    %34 = vector.extract_strided_slice %27 {offsets = [0, 64], sizes = [16, 32], strides = [1, 1]} : vector<16x96xf32> to vector<16x32xf32>
    %35 = arith.truncf %34 : vector<16x32xf32> to vector<16x32xbf16>
    %c0_16 = arith.constant 0 : index
    %c0_17 = arith.constant 0 : index
    %36 = vector.load %arg7[%c0_16, %c0_17] : memref<16x32xbf16, #tpu.memory_space<vmem>>, vector<16x32xbf16>
    tpu.vector_store %arg7[%c0_16, %c0_17], %35 {strides = array<i32>} : memref<16x32xbf16, #tpu.memory_space<vmem>>, vector<16x32xbf16>,
    return
  }
  func.func @transform_0(%arg0: i32) -> (i32, i32) {
    %c0_i32 = arith.constant 0 : i32
    %c0_i32_0 = arith.constant 0 : i32
    return %arg0, %c0_i32 : i32, i32
  }
  func.func @transform_1(%arg0: i32) -> (i32, i32) {
    %c0_i32 = arith.constant 0 : i32
    %c0_i32_0 = arith.constant 0 : i32
    %c0_i32_1 = arith.constant 0 : i32
    return %c0_i32, %c0_i32_0 : i32, i32
  }
  func.func @transform_2(%arg0: i32) -> (i32, i32) {
    %c0_i32 = arith.constant 0 : i32
    %c0_i32_0 = arith.constant 0 : i32
    %c0_i32_1 = arith.constant 0 : i32
    return %c0_i32, %c0_i32_0 : i32, i32
  }
  func.func @transform_3(%arg0: i32) -> (i32, i32) {
    %c0_i32 = arith.constant 0 : i32
    %c0_i32_0 = arith.constant 0 : i32
    %c0_i32_1 = arith.constant 0 : i32
    return %c0_i32, %c0_i32_0 : i32, i32
  }
  func.func @transform_4(%arg0: i32) -> (i32, i32) {
    %c0_i32 = arith.constant 0 : i32
    %c0_i32_0 = arith.constant 0 : i32
    return %arg0, %c0_i32 : i32, i32
  }
  func.func @transform_5(%arg0: i32) -> (i32, i32) {
    %c0_i32 = arith.constant 0 : i32
    %c0_i32_0 = arith.constant 0 : i32
    return %arg0, %c0_i32 : i32, i32
  }
  func.func @transform_6(%arg0: i32) -> (i32, i32) {
    %c0_i32 = arith.constant 0 : i32
    %c0_i32_0 = arith.constant 0 : i32
    return %arg0, %c0_i32 : i32, i32
  }
}

</mosaic_0001>

<bundles_post_ra>
// kernel: tpu_custom_call.1
= control target key start
LH: loop header
LB: loop body
LE: loop exit
PB: predicated region body
PF: predicated region fallthrough
CT: control target
= control target key end

     0   :  { %12 = vsyncpa [#allocation3], 0  ;;  %s475_s0 = inlined_call_operand.hbm [shape: f32[16,32], index: 0, kind: input, shape index: {}]   ;;  %s476_s1 = inlined_call_operand.vmem [shape: f32[1,32], index: 1, kind: input, shape index: {}]   ;;  %s477_s2 = inlined_call_operand.vmem [shape: f32[1,32], index: 2, kind: input, shape index: {}]   ;;  %s478_s3 = inlined_call_operand.hbm [shape: bf16[32,96], index: 3, kind: input, shape index: {}]   ;;  %s479_s4 = inlined_call_operand.hbm [shape: bf16[16,32], index: 4, kind: output, shape index: {0}]   ;;  %s480_s5 = inlined_call_operand.hbm [shape: bf16[16,32], index: 5, kind: output, shape index: {1}]   ;;  %s481_s6 = inlined_call_operand.hbm [shape: bf16[16,32], index: 6, kind: output, shape index: {2}]  }
   0x1   :  { %13 = vsyncpa [#allocation6], 0 }
   0x2   :  { %14 = vsyncpa [#allocation4], 0 }
   0x3   :  { %15 = vsyncpa [#allocation9], 0  ;;  %s382_s21 = smov [#allocation2]  }
   0x4   :  { %s21_s22 = sshll.u32 %s382_s21, 4  ;;  %s22_s22 = int_to_ptr.vmem [resolvable:$true] %s21_s22 }
   0x5   :  { %s282_s23 = scalar_lea.vmem %s22_s22, 256  ;;  %p287_p1 = scmp.lt.s32.totalorder %s22_s22, %s22_s22 }
   0x6   :  { %p283_p0 = scmp.ne.s32.totalorder %s22_s22, %s282_s23  ;;  %p288_p2 = scmp.lt.s32.totalorder %s282_s23, %s282_s23 }
   0x8   :  { %p289_p3 = por %p288_p2, %p287_p1 }
   0xa   :  { %p290_p4 = pnand %p289_p3, %p283_p0 }
   0xc   :  { %293 = shalt.err (!%p290_p4)
}
   0xd   :  { %s383_s24 = smov 128   ;;  %s384_s25 = smov 8  }
   0xe   :  { %27 = dma.hbm_to_vmem [thread:$0]  %s475_s0, 256, %s22_s22, [#allocation3], %s383_s24, %s383_s24, %s384_s25  }
   0xf   :  { %s385_s28 = smov [#allocation5]  }
  0x10   :  { %s37_s29 = sshll.u32 %s385_s28, 4  ;;  %s38_s29 = int_to_ptr.vmem [resolvable:$true] %s37_s29 }
  0x11   :  { %s302_s30 = scalar_lea.vmem %s38_s29, 256  ;;  %p307_p6 = scmp.lt.s32.totalorder %s38_s29, %s38_s29 }
  0x12   :  { %p303_p5 = scmp.ne.s32.totalorder %s38_s29, %s302_s30  ;;  %p308_p7 = scmp.lt.s32.totalorder %s302_s30, %s302_s30 }
  0x14   :  { %p309_p8 = por %p308_p7, %p307_p6 }
  0x16   :  { %p310_p9 = pnand %p309_p8, %p303_p5 }
  0x18   :  { %313 = shalt.err (!%p310_p9)
}
  0x19   :  { %s386_s7 = smov 64   ;;  %s387_s8 = smov 4  }
  0x1a   :  { %43 = dma.hbm_to_vmem [thread:$0]  %s478_s3, 256, %s38_s29, [#allocation6], %s386_s7, %s386_s7, %s387_s8  }
  0x1b   :  { %374 = dma.done.wait [#allocation3], 256  }
  0x1c   :  { %375 = vsyncadd [#allocation3], 4294967040 }
  0x1d   :  { %376 = dma.done.wait [#allocation6], 256  }
  0x1e   :  { %377 = vsyncadd [#allocation6], 4294967040  ;;  %vm53_vm0 = vcmask 261120   ;;  %v51_v0 = vld [vmem:[#allocation2] sm:$0xff]  ;;  %v52_v1 = vld [vmem:[#allocation2 + $0x8] sm:$0xff]  ;;  %v388_v15 = vmov 0.0  }
  0x1f   :  { %v54_v2 = vsel %vm53_vm0, %v51_v0, 0.0  ;;  %v57_v3 = vsel %vm53_vm0, %v52_v1, 0.0  ;;  %v268_v14 = vld [vmem:[#allocation5 + $0x8] sm:$0xff]   ;;  %248 = vmatprep.subr.bf16.mxu0 %v388_v15  ;;  %vm389_vm1 = vmmov 0   ;;  %v269_v16 = vld [vmem:[#allocation5] sm:$0xff]   ;;  %vm168_vm2 = vcmask 257024  }
  0x20   :  { %55 = vadd.xlane.f32.xlu0 %v54_v2  ;;  %252 = vmatprep.mubr.msk.bf16.mxu0 %vm389_vm1, %v388_v15  ;;  %v236_v25 = vld [vmem:[%s476_s1] ss:$0 sm:$0xff]  ;;  %s390_s13 = smov [#allocation7]   ;;  %s391_s1 = smov 96  }
  0x21   :  { %249 = vmatpush3.bf16.msra.mxu0 %v268_v14  ;;  %v237_v29 = vld [vmem:[%s477_s2] ss:$0 sm:$0xff]  ;;  %s192_s14 = sshll.u32 %s390_s13, 4  ;;  %s193_s14 = int_to_ptr.vmem [resolvable:$true] %s192_s14 }
  0x22   :  { %250 = vmatprep.subr.bf16.mxu0 %v388_v15  ;;  %s314_s2 = scalar_lea.vmem %s193_s14, 128  ;;  %p319_p11 = scmp.lt.s32.totalorder %s193_s14, %s193_s14 }
  0x23   :  { %p315_p10 = scmp.ne.s32.totalorder %s193_s14, %s314_s2  ;;  %p320_p12 = scmp.lt.s32.totalorder %s314_s2, %s314_s2 }
  0x24   :  { %58 = vadd.xlane.f32.xlu0 %v57_v3 }
  0x25   :  { %251 = vmatpush3.bf16.msra.mxu0 %v269_v16  ;;  %p321_p13 = por %p320_p12, %p319_p11 }
  0x27   :  { %p322_p0 = pnand %p321_p13, %p315_p10 }
  0xa9   :  { %v56_v4 = vpop.xlane.xlu0 %55 }
  0xaa   :  { %v61_v5 = vmul.f32 0.03125, %v56_v4 }
  0xac   :  { %v63_v6 = vsub.f32 %v51_v0, %v61_v5 }
  0xad   :  { %v59_v7 = vpop.xlane.xlu0 %58 }
  0xae   :  { %v62_v8 = vmul.f32 0.03125, %v59_v7  ;;  %v65_v9 = vmul.f32 %v63_v6, %v63_v6 }
  0xb0   :  { %v64_v10 = vsub.f32 %v52_v1, %v62_v8  ;;  %v67_v11 = vsel %vm53_vm0, %v65_v9, 0.0 }
  0xb1   :  { %68 = vadd.xlane.f32.xlu1 %v67_v11 }
  0xb2   :  { %v66_v12 = vmul.f32 %v64_v10, %v64_v10 }
  0xb4   :  { %v70_v13 = vsel %vm53_vm0, %v66_v12, 0.0 }
  0xb5   :  { %71 = vadd.xlane.f32.xlu1 %v70_v13 }
 0x13a   :  { %v69_v17 = vpop.xlane.xlu1 %68 }
 0x13b   :  { %v73_v18 = vmul.f32 0.03125, %v69_v17 }
 0x13d   :  { %v75_v19 = vadd.f32 1e-05, %v73_v18 }
 0x13e   :  { %v72_v20 = vpop.xlane.xlu1 %71 }
 0x13f   :  { %270 = vrsqrt.f32 %v75_v19  ;;  %v74_v21 = vmul.f32 0.03125, %v72_v20 }
 0x141   :  { %v76_v22 = vadd.f32 1e-05, %v74_v21 }
 0x143   :  { %272 = vrsqrt.f32 %v76_v22 }
 0x14c   :  { %v271_v23 = vpop.eup %270 }
 0x14d   :  { %v79_v24 = vmul.f32 %v271_v23, %v63_v6 }
 0x14f   :  { %v88_v28 = vmul.f32 %v236_v25, %v79_v24 }
 0x150   :  { %v273_v26 = vpop.eup %272 }
 0x151   :  { %v80_v27 = vmul.f32 %v273_v26, %v64_v10  ;;  %v97_v31 = vadd.f32 %v237_v29, %v88_v28 }
 0x153   :  { %v89_v30 = vmul.f32 %v236_v25, %v80_v27 }
 0x155   :  { %v98_v32 = vadd.f32 %v237_v29, %v89_v30 }
 0x157   :  { %v99_v33 = vpack.c.bf16 %v98_v32, %v97_v31 }
 0x159   :  { %253 = vmatmul.mubr.msk.bf16.vlgmr.msra.gmra.mxu0 %vm53_vm0, %v99_v33 }
 0x219   :  { %v153_v34 = vpop.f32.mrf.mxu0 }
 0x21a   :  { %v243_v35 = vpack.c.bf16 %v153_v34, %v153_v34 }
 0x21b   :  { %v254_v36 = vpop.f32.mrf.mxu0 }
 0x21c   :  { %179 = vrot.lane.b32.xlu1 %v243_v35, %s386_s7  ;;  %171 = vrot.lane.b32.xlu0 %v243_v35, %s391_s1  ;;  %169 = vst.msk [vmem:[#allocation7] sm:$0xf] %vm168_vm2, %v243_v35 }
 0x21d   :  { %v156_v37 = vpop.f32.mrf.mxu0 }
 0x21e   :  { %v244_v38 = vpack.c.bf16 %v156_v37, %v156_v37 }
 0x21f   :  { %v255_v39 = vpop.f32.mrf.mxu0 }
 0x220   :  { %173 = vrot.lane.b32.xlu1 %v244_v38, %s391_s1  ;;  %170 = vst.msk [vmem:[#allocation7 + $0x4] sm:$0xf] %vm168_vm2, %v244_v38 }
 0x221   :  { %325 = shalt.err (!%p322_p0)
}
 0x222   :  { %198 = dma.vmem_to_hbm [thread:$0]  %s193_s14, 128, %s479_s4, [#allocation4], %s386_s7, %s386_s7, %s387_s8  }
 0x223   :  { %s392_s17 = smov [#allocation8]   ;;  %s393_s19 = smov [#allocation10]  }
 0x224   :  { %181 = vrot.lane.b32.xlu1 %v244_v38, %s386_s7  ;;  %s204_s18 = sshll.u32 %s392_s17, 4  ;;  %s216_s20 = sshll.u32 %s393_s19, 4  ;;  %s205_s18 = int_to_ptr.vmem [resolvable:$true] %s204_s18  ;;  %s217_s20 = int_to_ptr.vmem [resolvable:$true] %s216_s20 }
 0x225   :  { %s334_s21 = scalar_lea.vmem %s205_s18, 128  ;;  %p339_p2 = scmp.lt.s32.totalorder %s205_s18, %s205_s18 }
 0x226   :  { %p335_p1 = scmp.ne.s32.totalorder %s205_s18, %s334_s21  ;;  %p340_p3 = scmp.lt.s32.totalorder %s334_s21, %s334_s21 }
 0x228   :  { %p341_p4 = por %p340_p3, %p339_p2 }
 0x22a   :  { %p342_p5 = pnand %p341_p4, %p335_p1 }
 0x28e   :  { %v180_v40 = vpop.permute.xlu1 %179  ;;  %v172_v41 = vpop.permute.xlu0 %171 }
 0x28f   :  { %185 = vst.msk [vmem:[#allocation10] sm:$0xf] %vm168_vm2, %v180_v40  ;;  %177 = vst.msk [vmem:[#allocation8] sm:$0xf] %vm168_vm2, %v172_v41 }
 0x292   :  { %v174_v42 = vpop.permute.xlu1 %173 }
 0x293   :  { %178 = vst.msk [vmem:[#allocation8 + $0x4] sm:$0xf] %vm168_vm2, %v174_v42 }
 0x294   :  { %345 = shalt.err (!%p342_p5)
}
 0x295   :  { %210 = dma.vmem_to_hbm [thread:$0]  %s205_s18, 128, %s480_s5, [#allocation9], %s386_s7, %s386_s7, %s387_s8  }
 0x296   :  { %v182_v43 = vpop.permute.xlu1 %181  ;;  %s354_s23 = scalar_lea.vmem %s217_s20, 128  ;;  %p359_p7 = scmp.lt.s32.totalorder %s217_s20, %s217_s20 }
 0x297   :  { %186 = vst.msk [vmem:[#allocation10 + $0x4] sm:$0xf] %vm168_vm2, %v182_v43  ;;  %p355_p6 = scmp.ne.s32.totalorder %s217_s20, %s354_s23  ;;  %p360_p8 = scmp.lt.s32.totalorder %s354_s23, %s354_s23 }
 0x299   :  { %p361_p9 = por %p360_p8, %p359_p7 }
 0x29b   :  { %p362_p10 = pnand %p361_p9, %p355_p6 }
 0x29d   :  { %365 = shalt.err (!%p362_p10)
}
 0x29e   :  { %222 = dma.vmem_to_hbm [thread:$0]  %s217_s20, 128, %s481_s6, [#allocation9], %s386_s7, %s386_s7, %s387_s8  }
 0x29f   :  { %378 = dma.done.wait [#allocation4], 128  }
 0x2a0   :  { %379 = vsyncadd [#allocation4], 4294967168 }
 0x2a1   :  { %380 = dma.done.wait [#allocation9], 256  }
 0x2a2   :  { %381 = vsyncadd [#allocation9], 4294967040 }
 0x2a3   :  { %232 = vsyncpa [#allocation3], 1 }
 0x2a4   :  { %233 = vsyncpa [#allocation6], 1 }
 0x2a5   :  { %234 = vsyncpa [#allocation4], 1 }
 0x2a6   :  { %235 = vsyncpa [#allocation9], 1 }

</bundles_post_ra>
